<compile_context>
chip_gen: v5e
topology: v5e:2x2
jax: 0.10.0
libtpu: 0.0.40
codegen_flags: <defaults>
</compile_context>

<pallas_src>
import functools

import jax
import jax.numpy as jnp
from jax import lax
from jax.experimental import pallas as pl
from jax.experimental.pallas import tpu as pltpu


def _round_up(n: int, m: int) -> int:
    return ((n + m - 1) // m) * m


def _round_down(n: int, m: int) -> int:
    return (n // m) * m


def _seq_pool_kernel(x_ref, w_ref, b_ref, o_ref, m_sc, l_sc, acc_sc,
                     *, seq_len: int, block_s: int, mask_s: bool):
    # x_ref: (TB, TS, D) native dtype | w_ref: (1, D) VMEM | b_ref: (1, 1) SMEM f32
    # o_ref: (TB, D) | scratch: m_sc/l_sc (TB, 1) f32, acc_sc (TB, D) f32
    si = pl.program_id(1)

    @pl.when(si == 0)
    def _init():
        m_sc[...] = jnp.full(m_sc.shape, -jnp.inf, m_sc.dtype)
        l_sc[...] = jnp.zeros(l_sc.shape, l_sc.dtype)
        acc_sc[...] = jnp.zeros(acc_sc.shape, acc_sc.dtype)

    x = x_ref[...]                                     # native dtype, no f32 copy
    w = w_ref[...].astype(x.dtype)                     # (1, D): weight on lane axis
    b = b_ref[0, 0]                                    # f32 scalar from SMEM

    if mask_s:
        # Ragged final S block: out-of-range positions hold unspecified data, so
        # zero x (kills NaN propagation into e*x) and push their scores to -inf.
        pos = si * block_s + lax.broadcasted_iota(jnp.int32, (1, block_s, 1), 1)
        valid = pos < seq_len                          # (1, TS, 1) bool
        x = jnp.where(valid, x, jnp.zeros_like(x))

    # Attention scores = Linear(D, 1): VPU broadcast-multiply + lane reduce,
    # accumulated in f32. Kept as (TB, TS, 1) so TS stays on sublanes and the
    # e * x broadcast below is lane-aligned.
    scores = jnp.sum(x * w[:, None, :], axis=-1, keepdims=True,
                     dtype=jnp.float32) + b            # (TB, TS, 1), f32
    if mask_s:
        scores = jnp.where(valid, scores, -jnp.inf)

    # Online (streaming) softmax over the sequence axis.
    m_prev = m_sc[...]                                            # (TB, 1)
    m_new = jnp.maximum(m_prev, jnp.max(scores, axis=1))          # (TB, 1)
    alpha = jnp.exp(m_prev - m_new)                               # (TB, 1)
    e = jnp.exp(scores - m_new[:, :, None])                       # (TB, TS, 1) f32

    l_sc[...] = alpha * l_sc[...] + jnp.sum(e, axis=1)            # (TB, 1)
    # e is f32, so the weighting stays in f32 regardless of x's dtype.
    acc_sc[...] = alpha * acc_sc[...] + jnp.sum(e * x, axis=1)    # (TB, D)
    m_sc[...] = m_new

    @pl.when(si == pl.num_programs(1) - 1)
    def _finalize():
        # Normalization folded into the (TB, D) result: one reciprocal per batch
        # tile of a (TB, 1) tensor, so full precision costs nothing (set
        # approx=True to use the EUP fast path if desired).
        inv_l = pl.reciprocal(l_sc[...], approx=False)
        o_ref[...] = (acc_sc[...] * inv_l).astype(o_ref.dtype)


def sequence_pooling(x: jax.Array, weight: jax.Array, bias: jax.Array,
                     *, tile_budget_bytes: int | None = None) -> jax.Array:
    """x: [B, S, D], weight: [D, 1], bias: [1]/[1,1] -> pooled: [B, D]."""
    B, S, D = x.shape
    itemsize = x.dtype.itemsize
    sub = 16 if itemsize == 2 else 8          # sublane packing for the batch tile

    # ---- per-generation VMEM budget ---------------------------------------
    try:
        vmem_cap = int(getattr(pltpu.get_tpu_info(), "vmem_capacity_bytes",
                               64 * 1024 * 1024))
    except Exception:                          # conservative fallback (v7x-sized)
        vmem_cap = 64 * 1024 * 1024
    if vmem_cap > 96 * 1024 * 1024:            # v5e / v6e: 128 MiB physical
        hard_cap = 104 * 1024 * 1024
    else:                                      # v7x-class: 64 MiB per TensorCore
        hard_cap = min(vmem_cap, 56 * 1024 * 1024)
    if tile_budget_bytes is None:
        tile_budget_bytes = hard_cap - 8 * 1024 * 1024   # headroom: out/acc/scratch

    # ---- lane-dense embedding dim (no-op for the deployed embed_dim = 256) --
    d_pad = D if D % 128 == 0 else _round_up(D, 128)
    w_row = weight.reshape(1, D)
    if d_pad != D:
        # Only taken when D % 128 != 0 (costs one extra HBM pass over x).
        x = jnp.pad(x, ((0, 0), (0, 0), (0, d_pad - D)))
        w_row = jnp.pad(w_row, ((0, 0), (0, d_pad - D)))
    b_smem = jnp.asarray(bias, dtype=jnp.float32).reshape(1, 1)

    # ---- tile selection -----------------------------------------------------
    # VMEM per input-tile element: 2x native (double-buffered input) + ~2x native
    # (x*w product, masked x) + 1x f32 (e*x product), plus margin.
    per_elem = 4 * itemsize + 8
    budget_elems = max(tile_budget_bytes // per_elem, sub * 8 * d_pad)

    # Target batch tile: whole batch, but keep >=2 (up to 4) grid steps so the
    # "parallel" batch axis can shard across both TensorCores on multi-TC chips.
    if B <= sub:
        tb_target = B
    elif B <= 4 * sub:
        tb_target = _round_up(pl.cdiv(B, 2), sub)
    else:
        tb_target = _round_up(pl.cdiv(B, 4), sub)

    rows_fit = _round_down(budget_elems // (S * d_pad), sub)
    if tb_target * S * d_pad <= budget_elems:
        tb, ts = tb_target, S                   # whole sequence per step
    elif rows_fit >= sub:
        tb, ts = min(rows_fit, tb_target), S    # shrink batch tile, keep full S
    else:
        # S-split online softmax: modest batch tile, TS fills the budget.
        tb = B if B <= sub else sub
        ts = _round_down(budget_elems // (tb * d_pad), 8)
        ts = max(8, min(ts, S))
    mask_s = (ts < S) and (S % ts != 0)

    grid = (pl.cdiv(B, tb), pl.cdiv(S, ts))

    est = tb * ts * d_pad * per_elem + 8 * 1024 * 1024
    vmem_limit = int(min(max(est, 32 * 1024 * 1024), hard_cap))

    kernel = functools.partial(_seq_pool_kernel, seq_len=S, block_s=ts,
                               mask_s=mask_s)

    out = pl.pallas_call(
        kernel,
        out_shape=jax.ShapeDtypeStruct((B, d_pad), x.dtype),
        grid_spec=pltpu.PrefetchScalarGridSpec(
            num_scalar_prefetch=0,
            grid=grid,
            in_specs=[
                # TODO(synk): on v5e/v6e consider pipeline_mode=pl.Buffered(3)
                # here if DMA is still exposed at step boundaries.
                pl.BlockSpec((tb, ts, d_pad), lambda bi, si: (bi, si, 0)),
                pl.BlockSpec((1, d_pad), lambda bi, si: (0, 0)),
                pl.BlockSpec(memory_space=pltpu.MemorySpace.SMEM),
            ],
            out_specs=pl.BlockSpec((tb, d_pad), lambda bi, si: (bi, 0)),
            scratch_shapes=[
                pltpu.VMEM((tb, 1), jnp.float32),       # running max
                pltpu.VMEM((tb, 1), jnp.float32),       # running denominator
                pltpu.VMEM((tb, d_pad), jnp.float32),   # running weighted sum
            ],
        ),
        compiler_params=pltpu.CompilerParams(
            dimension_semantics=("parallel", "arbitrary"),
            vmem_limit_bytes=vmem_limit,
        ),
    )(x, w_row, b_smem)

    return out if d_pad == D else out[:, :D]


def _reference(x, weight, bias):
    # Pure-f32 elementwise reference (avoids TPU bf16 matmul passes in einsum).
    w = weight.reshape(1, 1, -1).astype(jnp.float32)
    scores = jnp.sum(x.astype(jnp.float32) * w, axis=-1, keepdims=True)
    scores = scores + bias.astype(jnp.float32).reshape(1, 1, 1)
    attn = jax.nn.softmax(scores, axis=1)
    return jnp.sum(attn * x.astype(jnp.float32), axis=1).astype(x.dtype)


if __name__ == "__main__":
    def make_case(key, B, S, D, dtype=jnp.float32):
        kx, kw, kb = jax.random.split(key, 3)
        xs = jax.random.normal(kx, (B, S, D), dtype=dtype)
        bound = 1.0 / (D ** 0.5)   # nn.Linear(embed_dim, 1)-style init
        ws = jax.random.uniform(kw, (D, 1), minval=-bound, maxval=bound,
                                dtype=jnp.float32)
        bs = jax.random.uniform(kb, (1, 1), minval=-bound, maxval=bound,
                                dtype=jnp.float32)
        return xs, ws, bs

    # Case 1: tiny batch (B <= sublane tile) — single grid step, D padded to 128.
    x1, w1, b1 = make_case(jax.random.PRNGKey(0), 2, 8, 32)
    out1 = sequence_pooling(x1, w1, b1)
    jax.block_until_ready(out1)
    ref1 = _reference(x1, w1, b1)
    assert out1.shape == (2, 32)
    assert jnp.allclose(out1, ref1, atol=1e-5, rtol=1e-5), "case 1 mismatch"

    # Case 2: B > tile — multi-step batch grid with a ragged final block (no pad).
    x2, w2, b2 = make_case(jax.random.PRNGKey(1), 20, 16, 64)
    out2 = sequence_pooling(x2, w2, b2)
    jax.block_until_ready(out2)
    ref2 = _reference(x2, w2, b2)
    assert out2.shape == (20, 64)
    assert jnp.allclose(out2, ref2, atol=1e-5, rtol=1e-5), "case 2 mismatch"

    # Case 3: small VMEM-budget override forces the S-split online softmax with
    # a ragged (masked) final sequence block.
    x3, w3, b3 = make_case(jax.random.PRNGKey(2), 4, 40, 128)
    out3 = sequence_pooling(x3, w3, b3, tile_budget_bytes=300_000)
    jax.block_until_ready(out3)
    ref3 = _reference(x3, w3, b3)
    assert out3.shape == (4, 128)
    assert jnp.allclose(out3, ref3, atol=1e-5, rtol=1e-5), "case 3 mismatch"

    print("KERNEL_OK")
</pallas_src>

<mosaic_0001>
module attributes {stable_mosaic.version = 11 : i64} {
  func.func @_seq_pool_kernel(%arg0: i32, %arg1: i32, %arg2: memref<2x8x128xf32, #tpu.memory_space<vmem>>, %arg3: memref<1x128xf32, #tpu.memory_space<vmem>>, %arg4: memref<1x1xf32, #tpu.memory_space<smem>>, %arg5: memref<2x128xf32, #tpu.memory_space<vmem>>, %arg6: memref<2x1xf32, #tpu.memory_space<vmem>>, %arg7: memref<2x1xf32, #tpu.memory_space<vmem>>, %arg8: memref<2x128xf32, #tpu.memory_space<vmem>>) attributes {dimension_semantics = [#tpu.dimension_semantics<parallel>, #tpu.dimension_semantics<arbitrary>], iteration_bounds = array<i64: 1, 1>, scalar_prefetch = 0 : i64, scratch_operands = 3 : i64, tpu.core_type = #tpu.core_type<tc>, window_params = [{transform_indices = @transform_0, window_bounds = array<i64: 2, 8, 128>}, {pipeline_mode = #tpu.pipeline_mode<synchronous>, transform_indices = @transform_1, window_bounds = array<i64: 1, 128>}, {transform_indices = @transform_2, window_bounds = array<i64: 1, 1>}, {transform_indices = @transform_3, window_bounds = array<i64: 2, 128>}]} {
    %c0_i32 = arith.constant 0 : i32
    %0 = arith.cmpi eq, %arg1, %c0_i32 : i32
    %1 = arith.extui %0 : i1 to i32
    %c0_i32_0 = arith.constant 0 : i32
    %2 = arith.cmpi ne, %1, %c0_i32_0 : i32
    scf.if %2 {
      %cst_24 = arith.constant 0xFF800000 : f32
      %39 = vector.broadcast %cst_24 : f32 to vector<2x1xf32>
      %c0_25 = arith.constant 0 : index
      %c0_26 = arith.constant 0 : index
      %40 = vector.load %arg6[%c0_25, %c0_26] : memref<2x1xf32, #tpu.memory_space<vmem>>, vector<2x1xf32>
      tpu.vector_store %arg6[%c0_25, %c0_26], %39 {strides = array<i32>} : memref<2x1xf32, #tpu.memory_space<vmem>>, vector<2x1xf32>,
      %cst_27 = arith.constant 0.000000e+00 : f32
      %41 = vector.broadcast %cst_27 : f32 to vector<2x1xf32>
      %c0_28 = arith.constant 0 : index
      %c0_29 = arith.constant 0 : index
      %42 = vector.load %arg7[%c0_28, %c0_29] : memref<2x1xf32, #tpu.memory_space<vmem>>, vector<2x1xf32>
      tpu.vector_store %arg7[%c0_28, %c0_29], %41 {strides = array<i32>} : memref<2x1xf32, #tpu.memory_space<vmem>>, vector<2x1xf32>,
      %cst_30 = arith.constant 0.000000e+00 : f32
      %43 = vector.broadcast %cst_30 : f32 to vector<2x128xf32>
      %c0_31 = arith.constant 0 : index
      %c0_32 = arith.constant 0 : index
      %44 = vector.load %arg8[%c0_31, %c0_32] : memref<2x128xf32, #tpu.memory_space<vmem>>, vector<2x128xf32>
      tpu.vector_store %arg8[%c0_31, %c0_32], %43 {strides = array<i32>} : memref<2x128xf32, #tpu.memory_space<vmem>>, vector<2x128xf32>,
    } else {
    }
    %c0 = arith.constant 0 : index
    %c0_1 = arith.constant 0 : index
    %c0_2 = arith.constant 0 : index
    %3 = vector.load %arg2[%c0, %c0_1, %c0_2] : memref<2x8x128xf32, #tpu.memory_space<vmem>>, vector<2x8x128xf32>
    %c0_3 = arith.constant 0 : index
    %c0_4 = arith.constant 0 : index
    %4 = vector.load %arg3[%c0_3, %c0_4] : memref<1x128xf32, #tpu.memory_space<vmem>>, vector<1x128xf32>
    %c0_5 = arith.constant 0 : index
    %c0_6 = arith.constant 0 : index
    %5 = memref.load %arg4[%c0_5, %c0_6] : memref<1x1xf32, #tpu.memory_space<smem>>
    %6 = vector.shape_cast %4 : vector<1x128xf32> to vector<1x1x128xf32>
    %7 = vector.broadcast %6 : vector<1x1x128xf32> to vector<2x8x128xf32>
    %8 = arith.mulf %3, %7 : vector<2x8x128xf32>
    %cst = arith.constant dense<0.000000e+00> : vector<2x8xf32>
    %9 = vector.multi_reduction <add>, %8, %cst [2] : vector<2x8x128xf32> to vector<2x8xf32>
    %10 = vector.shape_cast %9 : vector<2x8xf32> to vector<2x8x1xf32>
    %11 = vector.broadcast %5 : f32 to vector<2x8x1xf32>
    %12 = arith.addf %10, %11 : vector<2x8x1xf32>
    %c0_7 = arith.constant 0 : index
    %c0_8 = arith.constant 0 : index
    %13 = vector.load %arg6[%c0_7, %c0_8] : memref<2x1xf32, #tpu.memory_space<vmem>>, vector<2x1xf32>
    %cst_9 = arith.constant dense<0xFF800000> : vector<2x1xf32>
    %14 = vector.multi_reduction <maximumf>, %12, %cst_9 [1] : vector<2x8x1xf32> to vector<2x1xf32>
    %15 = arith.maximumf %13, %14 : vector<2x1xf32>
    %16 = arith.subf %13, %15 : vector<2x1xf32>
    %17 = math.exp %16 : vector<2x1xf32>
    %18 = vector.shape_cast %15 : vector<2x1xf32> to vector<2x1x1xf32>
    %19 = vector.broadcast %18 : vector<2x1x1xf32> to vector<2x8x1xf32>
    %20 = arith.subf %12, %19 : vector<2x8x1xf32>
    %21 = math.exp %20 : vector<2x8x1xf32>
    %c0_10 = arith.constant 0 : index
    %c0_11 = arith.constant 0 : index
    %22 = vector.load %arg7[%c0_10, %c0_11] : memref<2x1xf32, #tpu.memory_space<vmem>>, vector<2x1xf32>
    %23 = arith.mulf %17, %22 : vector<2x1xf32>
    %cst_12 = arith.constant dense<0.000000e+00> : vector<2x1xf32>
    %24 = vector.multi_reduction <add>, %21, %cst_12 [1] : vector<2x8x1xf32> to vector<2x1xf32>
    %25 = arith.addf %23, %24 : vector<2x1xf32>
    %c0_13 = arith.constant 0 : index
    %c0_14 = arith.constant 0 : index
    %26 = vector.load %arg7[%c0_13, %c0_14] : memref<2x1xf32, #tpu.memory_space<vmem>>, vector<2x1xf32>
    tpu.vector_store %arg7[%c0_13, %c0_14], %25 {strides = array<i32>} : memref<2x1xf32, #tpu.memory_space<vmem>>, vector<2x1xf32>,
    %c0_15 = arith.constant 0 : index
    %c0_16 = arith.constant 0 : index
    %27 = vector.load %arg8[%c0_15, %c0_16] : memref<2x128xf32, #tpu.memory_space<vmem>>, vector<2x128xf32>
    %28 = vector.broadcast %17 : vector<2x1xf32> to vector<2x128xf32>
    %29 = arith.mulf %28, %27 : vector<2x128xf32>
    %30 = vector.broadcast %21 : vector<2x8x1xf32> to vector<2x8x128xf32>
    %31 = arith.mulf %30, %3 : vector<2x8x128xf32>
    %cst_17 = arith.constant dense<0.000000e+00> : vector<2x128xf32>
    %32 = vector.multi_reduction <add>, %31, %cst_17 [1] : vector<2x8x128xf32> to vector<2x128xf32>
    %33 = arith.addf %29, %32 : vector<2x128xf32>
    %c0_18 = arith.constant 0 : index
    %c0_19 = arith.constant 0 : index
    %34 = vector.load %arg8[%c0_18, %c0_19] : memref<2x128xf32, #tpu.memory_space<vmem>>, vector<2x128xf32>
    tpu.vector_store %arg8[%c0_18, %c0_19], %33 {strides = array<i32>} : memref<2x128xf32, #tpu.memory_space<vmem>>, vector<2x128xf32>,
    %c0_20 = arith.constant 0 : index
    %c0_21 = arith.constant 0 : index
    %35 = vector.load %arg6[%c0_20, %c0_21] : memref<2x1xf32, #tpu.memory_space<vmem>>, vector<2x1xf32>
    tpu.vector_store %arg6[%c0_20, %c0_21], %15 {strides = array<i32>} : memref<2x1xf32, #tpu.memory_space<vmem>>, vector<2x1xf32>,
    %c0_i32_22 = arith.constant 0 : i32
    %36 = arith.cmpi eq, %arg1, %c0_i32_22 : i32
    %37 = arith.extui %36 : i1 to i32
    %c0_i32_23 = arith.constant 0 : i32
    %38 = arith.cmpi ne, %37, %c0_i32_23 : i32
    scf.if %38 {
      %c0_24 = arith.constant 0 : index
      %c0_25 = arith.constant 0 : index
      %39 = vector.load %arg7[%c0_24, %c0_25] : memref<2x1xf32, #tpu.memory_space<vmem>>, vector<2x1xf32>
      %40 = tpu.reciprocal %39 : vector<2x1xf32> -> vector<2x1xf32>
      %c0_26 = arith.constant 0 : index
      %c0_27 = arith.constant 0 : index
      %41 = vector.load %arg8[%c0_26, %c0_27] : memref<2x128xf32, #tpu.memory_space<vmem>>, vector<2x128xf32>
      %42 = vector.broadcast %40 : vector<2x1xf32> to vector<2x128xf32>
      %43 = arith.mulf %41, %42 : vector<2x128xf32>
      %c0_28 = arith.constant 0 : index
      %c0_29 = arith.constant 0 : index
      %44 = vector.load %arg5[%c0_28, %c0_29] : memref<2x128xf32, #tpu.memory_space<vmem>>, vector<2x128xf32>
      tpu.vector_store %arg5[%c0_28, %c0_29], %43 {strides = array<i32>} : memref<2x128xf32, #tpu.memory_space<vmem>>, vector<2x128xf32>,
    } else {
    }
    return
  }
  func.func @transform_0(%arg0: i32, %arg1: i32) -> (i32, i32, i32) {
    %c0_i32 = arith.constant 0 : i32
    %c0_i32_0 = arith.constant 0 : i32
    return %arg0, %arg1, %c0_i32 : i32, i32, i32
  }
  func.func @transform_1(%arg0: i32, %arg1: i32) -> (i32, i32) {
    %c0_i32 = arith.constant 0 : i32
    %c0_i32_0 = arith.constant 0 : i32
    %c0_i32_1 = arith.constant 0 : i32
    return %c0_i32, %c0_i32_0 : i32, i32
  }
  func.func @transform_2(%arg0: i32, %arg1: i32) -> (i32, i32) {
    %c0_i32 = arith.constant 0 : i32
    %c0_i32_0 = arith.constant 0 : i32
    %c0_i32_1 = arith.constant 0 : i32
    return %c0_i32, %c0_i32_0 : i32, i32
  }
  func.func @transform_3(%arg0: i32, %arg1: i32) -> (i32, i32) {
    %c0_i32 = arith.constant 0 : i32
    %c0_i32_0 = arith.constant 0 : i32
    return %arg0, %c0_i32 : i32, i32
  }
}

</mosaic_0001>

<bundles_post_ra>
// kernel: tpu_custom_call.1
= control target key start
LH: loop header
LB: loop body
LE: loop exit
PB: predicated region body
PF: predicated region fallthrough
CT: control target
= control target key end

     0   :  { %9 = vsyncpa [#allocation7], 0  ;;  %s320_s0 = inlined_call_operand.hbm [shape: f32[2,8,128], index: 0, kind: input, shape index: {}]   ;;  %s321_s1 = inlined_call_operand.vmem [shape: f32[1,128], index: 1, kind: input, shape index: {}]   ;;  %s322_s2 = inlined_call_operand.<no memory space> [shape: f32[1,1], index: 2, kind: input, shape index: {}]   ;;  %s323_s3 = inlined_call_operand.hbm [shape: f32[2,128], index: 3, kind: output, shape index: {}]  }
   0x1   :  { %10 = vsyncpa [#allocation8], 0  ;;  %s15_s14 = sshll.u32 %s320_s0, 4  ;;  %s266_s15 = smov [#allocation6]   ;;  %s16_s14 = int_to_ptr.hbm [resolvable:$true] %s15_s14 }
   0x2   :  { %s17_s16 = sshll.u32 %s266_s15, 4  ;;  %s267_s17 = smov 128   ;;  %s18_s16 = int_to_ptr.vmem [resolvable:$true] %s17_s16 }
   0x3   :  { %s268_s18 = smov 8  }
   0x4   :  { %23 = dma.hbm_to_vmem [thread:$0]  %s16_s14, 256, %s18_s16, [#allocation7], %s267_s17, %s267_s17, %s268_s18  }
   0x5   :  { %262 = dma.done.wait [#allocation7], 256  }
   0x6   :  { %263 = vsyncadd [#allocation7], 4294967040  ;;  %v296_v0 = vld [vmem:[#allocation6] sm:$0xff]  ;;  %v205_v1 = vld [vmem:[%s321_s1] ss:$0 sm:$0xff]  ;;  %vm36_vm0 = vcmask 1024   ;;  %v53_v7 = vstv %s322_s2 }
   0x7   :  { %v47_v2 = vmul.f32 %v205_v1, %v296_v0  ;;  %v302_v3 = vld [vmem:[#allocation6 + $0x8] sm:$0xff]  ;;  %v269_v5 = vmov -inf   ;;  %v270_v6 = vmov 0.0   ;;  %v271_v11 = vmov 0   ;;  %s272_s1 = smov [#allocation9]   ;;  %s185_s24 = sshll.u32 %s323_s3, 4  ;;  %s186_s24 = int_to_ptr.hbm [resolvable:$true] %s185_s24 }
   0x8   :  { %v48_v4 = vmul.f32 %v205_v1, %v302_v3  ;;  %37 = vst.msk [vmem:[#allocation2] sm:$0x3] %vm36_vm0, %v269_v5  ;;  %203 = vset.pattern.permute.xlu2 %v271_v11  ;;  %202 = vset.pattern.permute.xlu1 %v271_v11  ;;  %vm71_vm1 = vcmask 1041409   ;;  %vm92_vm2 = vcmask 7168   ;;  %s183_s2 = sshll.u32 %s272_s1, 4  ;;  %s184_s2 = int_to_ptr.vmem [resolvable:$true] %s183_s2 }
   0x9   :  { %49 = vadd.xlane.f32.xlu0 %v47_v2  ;;  %38 = vst.msk [vmem:[#allocation3] sm:$0x3] %vm36_vm0, %v270_v6 }
   0xa   :  { %39 = vst [vmem:[#allocation4] sm:$0x3] %v270_v6  ;;  %204 = vset.pattern.permute.xlu0 %v271_v11 }
   0xf   :  { %v56_v24 = vld [vmem:[#allocation2] sm:$0x3] }
  0x10   :  { %v90_v52 = vld [vmem:[#allocation3] sm:$0x3] }
  0x11   :  { %51 = vadd.xlane.f32.xlu0 %v48_v4 }
  0x7c   :  { %v50_v8 = vpop.xlane.xlu0 %49 }
  0x7d   :  { %v54_v9 = vadd.f32 %v53_v7, %v50_v8 }
  0x7f   :  { %v57_v10 = vrot.slane %v54_v9, 4 }
  0x81   :  { %v58_v12 = vmax.f32 %v54_v9, %v57_v10 }
  0x83   :  { %v59_v14 = vrot.slane %v58_v12, 2 }
  0x84   :  { %v52_v13 = vpop.xlane.xlu0 %51 }
  0x85   :  { %v55_v15 = vadd.f32 %v53_v7, %v52_v13  ;;  %v60_v17 = vmax.f32 %v58_v12, %v59_v14 }
  0x87   :  { %v63_v16 = vrot.slane %v55_v15, 4  ;;  %v61_v20 = vrot.slane %v60_v17, 1 }
  0x89   :  { %v64_v18 = vmax.f32 %v55_v15, %v63_v16  ;;  %v62_v23 = vmax.f32 %v60_v17, %v61_v20  ;;  %v114_v20 = vld [vmem:[#allocation4] sm:$0x3] }
  0x8b   :  { %v65_v19 = vrot.slane %v64_v18, 2 }
  0x8d   :  { %v66_v21 = vmax.f32 %v64_v18, %v65_v19 }
  0x8f   :  { %v67_v22 = vrot.slane %v66_v21, 1 }
  0x91   :  { %v68_v25 = vmax.f32 %v66_v21, %v67_v22 }
  0x93   :  { %v72_v26 = vsel %vm71_vm1, %v68_v25, %v62_v23 }
  0x94   :  { %v74_v27 = vmax.f32 %v56_v24, %v72_v26 }
  0x96   :  { %v79_v28 = vrot.slane %v74_v27, 1  ;;  %151 = vst.msk [vmem:[#allocation2] sm:$0x3] %vm36_vm0, %v74_v27  ;;  %v75_v29 = vsub.f32 %v56_v24, %v74_v27  ;;  %v80_v30 = vperm.slane %v74_v27, 0 }
  0x98   :  { %v81_v31 = vperm.slane %v79_v28, 0  ;;  %v76_v32 = vmul.f32 1.442695, %v75_v29  ;;  %v84_v33 = vsub.f32 %v54_v9, %v80_v30 }
  0x9a   :  { %v85_v34 = vsub.f32 %v55_v15, %v81_v31  ;;  %206 = vpow2.f32 %v76_v32  ;;  %v86_v35 = vmul.f32 1.442695, %v84_v33 }
  0x9c   :  { %v88_v36 = vmul.f32 1.442695, %v85_v34  ;;  %208 = vpow2.f32 %v86_v35 }
  0x9e   :  { %210 = vpow2.f32 %v88_v36 }
  0xa0   :  { %v207_v37 = vpop.eup %206 }
  0xa1   :  { %117 = vperm.xlu2 %203, %v207_v37   ;;  %v91_v55 = vmul.f32 %v207_v37, %v90_v52 }
  0xa2   :  { %v209_v38 = vpop.eup %208 }
  0xa3   :  { %123 = vperm.xlu1 %202, %v209_v38   ;;  %v93_v39 = vsel %vm92_vm2, %v209_v38, 0.0 }
  0xa4   :  { %v211_v40 = vpop.eup %210  ;;  %v94_v41 = vrot.slane %v93_v39, 4 }
  0xa5   :  { %v100_v42 = vsel %vm92_vm2, %v211_v40, 0.0 }
  0xa6   :  { %v101_v43 = vrot.slane %v100_v42, 4  ;;  %v95_v44 = vadd.f32 %v94_v41, %v93_v39 }
  0xa8   :  { %v102_v45 = vadd.f32 %v101_v43, %v100_v42  ;;  %v96_v46 = vrot.slane %v95_v44, 2 }
  0xaa   :  { %v103_v47 = vrot.slane %v102_v45, 2  ;;  %v97_v48 = vadd.f32 %v96_v46, %v95_v44 }
  0xab   :  { %128 = vperm.xlu1 %202, %v211_v40  }
  0xac   :  { %v104_v49 = vadd.f32 %v103_v47, %v102_v45  ;;  %v98_v50 = vrot.slane %v97_v48, 1 }
  0xae   :  { %v105_v51 = vrot.slane %v104_v49, 1  ;;  %v99_v54 = vadd.f32 %v98_v50, %v97_v48 }
  0xb0   :  { %v106_v53 = vadd.f32 %v105_v51, %v104_v49 }
  0xb2   :  { %v109_v56 = vsel %vm71_vm1, %v106_v53, %v99_v54 }
  0xb3   :  { %v111_v57 = vadd.f32 %v109_v56, %v91_v55 }
  0xb5   :  { %113 = vst.msk [vmem:[#allocation3] sm:$0x3] %vm36_vm0, %v111_v57 }
  0xbc   :  { %v155_v58 = vld [vmem:[#allocation3] sm:$0x3] }
  0xbd   :  { %212 = vrcp.f32 %v155_v58  ;;  %v167_v62 = vand.u32 2147483648, %v155_v58  ;;  %v165_v1 = vand.u32 2147483647, %v155_v58  ;;  %vm161_vm4 = vweird.f32 %v155_v58 }
  0xbf   :  { %v168_v4 = vor.u32 1.1754944e-38, %v167_v62  ;;  %vm166_vm6 = vcmp.eq.f32.partialorder %v165_v1, 8.507059e+37 }
  0xc3   :  { %v213_v59 = vpop.eup %212 }
  0xc4   :  { %v157_v60 = vmul.f32 %v213_v59, %v155_v58  ;;  %vm162_vm3 = vweird.f32 %v213_v59 }
  0xc5   :  { %vm163_vm5 = vmor %vm161_vm4, %vm162_vm3 }
  0xc6   :  { %v158_v61 = vsub.f32 1.0, %v157_v60 }
  0xc8   :  { %v159_v63 = vmul.f32 %v213_v59, %v158_v61 }
  0xca   :  { %v160_v2 = vadd.f32 %v213_v59, %v159_v63 }
  0xcc   :  { %v164_v5 = vsel %vm163_vm5, %v213_v59, %v160_v2 }
  0xcd   :  { %v169_v6 = vsel %vm166_vm6, %v168_v4, %v164_v5 }
  0xce   :  { %173 = vperm.xlu2 %203, %v169_v6  }
  0xfb   :  { %v118_v21 = vpop.permute.xlu2 %117 }
  0xfc   :  { %v120_v25 = vmul.f32 %v118_v21, %v114_v20 }
 0x115   :  { %v124_v7 = vpop.permute.xlu1 %123 }
 0x116   :  { %v131_v8 = vmul.f32 %v124_v7, %v296_v0 }
 0x118   :  { %v133_v9 = vrot.slane %v131_v8, 4 }
 0x11a   :  { %v134_v10 = vadd.f32 %v133_v9, %v131_v8 }
 0x11c   :  { %v135_v12 = vrot.slane %v134_v10, 2 }
 0x11d   :  { %v129_v11 = vpop.permute.xlu1 %128 }
 0x11e   :  { %v132_v13 = vmul.f32 %v129_v11, %v302_v3  ;;  %v136_v15 = vadd.f32 %v135_v12, %v134_v10 }
 0x120   :  { %v139_v14 = vrot.slane %v132_v13, 4  ;;  %v137_v18 = vrot.slane %v136_v15, 1 }
 0x122   :  { %v140_v16 = vadd.f32 %v139_v14, %v132_v13  ;;  %v138_v23 = vadd.f32 %v137_v18, %v136_v15 }
 0x124   :  { %v141_v17 = vrot.slane %v140_v16, 2 }
 0x126   :  { %v142_v19 = vadd.f32 %v141_v17, %v140_v16 }
 0x128   :  { %v143_v22 = vrot.slane %v142_v19, 1  ;;  %v174_v27 = vpop.permute.xlu2 %173 }
 0x12a   :  { %v144_v24 = vadd.f32 %v143_v22, %v142_v19 }
 0x12c   :  { %v147_v0 = vsel %vm71_vm1, %v144_v24, %v138_v23 }
 0x12d   :  { %v149_v26 = vadd.f32 %v147_v0, %v120_v25 }
 0x12f   :  { %150 = vst [vmem:[#allocation4] sm:$0x3] %v149_v26 }
 0x136   :  { %v170_v3 = vld [vmem:[#allocation4] sm:$0x3] }
 0x137   :  { %v176_v28 = vmul.f32 %v174_v27, %v170_v3 }
 0x139   :  { %177 = vst [vmem:[#allocation9] sm:$0x3] %v176_v28 }
 0x13a   :  { %188 = dma.vmem_to_hbm [thread:$0]  %s184_s2, 32, %s186_s24, [#allocation8]  }
 0x13b   :  { %264 = dma.done.wait [#allocation8], 32  }
 0x13c   :  { %265 = vsyncadd [#allocation8], 4294967264 }
 0x13d   :  { %193 = vsyncpa [#allocation7], 1 }
 0x13e   :  { %194 = vsyncpa [#allocation8], 1 }

</bundles_post_ra>
